<compile_context>
chip_gen: v7x
topology: tpu7x:2x2x1
jax: 0.10.0
libtpu: 0.0.40
codegen_flags: <defaults>
</compile_context>

<pallas_src>
import functools
import math

import jax
import jax.numpy as jnp
from jax.experimental import pallas as pl
from jax.experimental.pallas import tpu as pltpu

LN_EPS = 1e-5


def _round_up(x, m):
    return (x + m - 1) // m * m


def _gelu(h, approximate):
    if approximate:
        # tanh-approximate GELU: transcendental lands on the EUP slot, freeing
        # the VPU on v6e/v7x.  Not bit-matched to nn.GELU()'s erf default.
        return jax.nn.gelu(h, approximate=True)
    return 0.5 * h * (1.0 + jax.lax.erf(h * (1.0 / math.sqrt(2.0))))


def _layernorm(x_f32, gamma, beta, true_c):
    """LayerNorm over the real C channels; padded lanes (zero x/gamma/beta) stay zero."""
    inv_c = 1.0 / float(true_c)
    mean = jnp.sum(x_f32, axis=-1, keepdims=True) * inv_c
    cen = x_f32 - mean
    if x_f32.shape[-1] != true_c:  # mask padded channel lanes before the variance
        lane = jax.lax.broadcasted_iota(jnp.int32, (1, x_f32.shape[-1]), 1)
        cen = cen * (lane < true_c).astype(jnp.float32)
    var = jnp.sum(cen * cen, axis=-1, keepdims=True) * inv_c
    xn = cen * jax.lax.rsqrt(var + LN_EPS)
    return xn * gamma + beta


# --------------------------------------------------------------------------- #
# Kernels
# --------------------------------------------------------------------------- #
def mlp_block_kernel_fused(x_ref, gamma_ref, beta_ref, w1_ref, b1_ref, w2_ref,
                           b2_ref, o_ref, *, true_c, approx_gelu):
    """Single-H-tile path: full MLP per row tile, weights resident, no scratch."""
    x = x_ref[...].astype(jnp.float32)
    xn = _layernorm(x, gamma_ref[...], beta_ref[...], true_c)
    # bf16 MXU operands, f32 accumulation.
    h = jnp.dot(xn.astype(jnp.bfloat16), w1_ref[...],
                preferred_element_type=jnp.float32) + b1_ref[...]
    h = _gelu(h, approx_gelu)
    y = jnp.dot(h.astype(jnp.bfloat16), w2_ref[...],
                preferred_element_type=jnp.float32) + b2_ref[...] + x
    o_ref[...] = y.astype(o_ref.dtype)


def mlp_block_kernel_htiled(x_ref, gamma_ref, beta_ref, w1_ref, b1_ref, w2_ref,
                            b2_ref, o_ref, xn_ref, acc_ref, *, true_c, approx_gelu):
    """H-tiled path: hidden axis is the last ('arbitrary') reduction grid axis."""
    j = pl.program_id(1)

    @pl.when(j == 0)
    def _():
        x = x_ref[...].astype(jnp.float32)
        xn = _layernorm(x, gamma_ref[...], beta_ref[...], true_c)
        xn_ref[...] = xn.astype(jnp.bfloat16)   # cached bf16 MXU operand for all H tiles
        acc_ref[...] = jnp.zeros_like(acc_ref)

    h = jnp.dot(xn_ref[...], w1_ref[...],
                preferred_element_type=jnp.float32) + b1_ref[...]
    h = _gelu(h, approx_gelu)
    acc_ref[...] += jnp.dot(h.astype(jnp.bfloat16), w2_ref[...],
                            preferred_element_type=jnp.float32)

    @pl.when(j == pl.num_programs(1) - 1)
    def _():
        y = acc_ref[...] + b2_ref[...] + x_ref[...].astype(jnp.float32)
        o_ref[...] = y.astype(o_ref.dtype)


# --------------------------------------------------------------------------- #
# Feature / hardware probes (narrow, one-time; real kernel errors propagate)
# --------------------------------------------------------------------------- #
def _copy_probe_kernel(x_ref, o_ref):
    o_ref[...] = x_ref[...]


@functools.lru_cache(maxsize=1)
def _single_buffer_supported():
    """Compile+run a trivial kernel using pipeline_mode=pl.Buffered(1)."""
    if not hasattr(pl, "Buffered"):
        return False
    try:
        spec = pl.BlockSpec((8, 128), lambda i: (0, 0), pipeline_mode=pl.Buffered(1))
        fn = pl.pallas_call(
            _copy_probe_kernel,
            out_shape=jax.ShapeDtypeStruct((8, 128), jnp.float32),
            grid_spec=pltpu.PrefetchScalarGridSpec(
                num_scalar_prefetch=0,
                grid=(1,),
                in_specs=[spec],
                out_specs=pl.BlockSpec((8, 128), lambda i: (0, 0)),
            ),
        )
        jax.block_until_ready(fn(jnp.zeros((8, 128), jnp.float32)))
        return True
    except Exception:  # feature probe only — never wraps the real kernel
        return False


@functools.lru_cache(maxsize=1)
def _vmem_budget_bytes():
    """Generation-aware VMEM cap: ~48 MiB on 64-MiB parts (v7x), ~100 MiB on 128-MiB parts."""
    phys = None
    try:
        phys = getattr(pltpu.get_tpu_info(), "vmem_capacity_bytes", None)
    except Exception:
        phys = None
    if not phys:
        phys = 64 << 20  # conservative default (v7x-sized VMEM)
    return int(max(min(int(phys) - (16 << 20), 100 << 20), 32 << 20))


def _plan_tiles(rows, Cp, Hp, itemsize, wbuf, budget):
    """Pick (row_tile, h_tile) from the VMEM budget. Prefers resident weights,
    then the largest row tile. Keeps >=2 row tiles so v7x's two TCs both work."""
    max_rt = min(1024, _round_up(rows, 8))
    if rows >= 16:
        max_rt = min(max_rt, _round_up(-(-rows // 2), 8))
    row_candidates = sorted(
        {rt for rt in (max_rt, 1024, 768, 512, 384, 256, 128, 64, 32, 16, 8) if rt <= max_rt},
        reverse=True)
    h_candidates = [Hp] + [t for t in (2048, 1024, 512, 384, 256, 128)
                           if t < Hp and Hp % t == 0]

    def est(rt, ht):
        n_h = Hp // ht
        w_buf = wbuf if n_h == 1 else 2            # w1/b1/w2 vary with j when H is tiled
        e = (2 * rt * Cp * itemsize                # x blocks (double-buffered)
             + 2 * rt * Cp * itemsize              # out blocks
             + w_buf * Cp * ht * 2                 # w1 (bf16)
             + w_buf * ht * Cp * 2                 # w2 (bf16)
             + wbuf * 3 * Cp * 4                   # gamma, beta, b2 (f32)
             + w_buf * ht * 4                      # b1 (f32)
             + rt * ht * 4)                        # fc1/GELU intermediate (f32)
        if n_h > 1:
            e += rt * Cp * (2 + 4)                 # xn (bf16) + acc (f32) scratch
        return e + (2 << 20)                       # fixed headroom for compiler internals

    for ht in h_candidates:
        for rt in row_candidates:
            if est(rt, ht) <= budget:
                return rt, ht, est(rt, ht)
    rt, ht = row_candidates[-1], h_candidates[-1]
    return rt, ht, est(rt, ht)


# --------------------------------------------------------------------------- #
# Wrapper
# --------------------------------------------------------------------------- #
def mlp_block(x, gamma, beta, w1, b1, w2, b2, *, approximate_gelu=False):
    """y = x + fc2(GELU(fc1(LayerNorm(x)))).  x: (B, L, C); w1: (C, H); w2: (H, C)."""
    B, L, C = x.shape
    H = w1.shape[1]
    rows = B * L

    Cp = _round_up(C, 128)
    Hp = _round_up(H, 128)

    use_single_buffer = _single_buffer_supported()
    wbuf = 1 if use_single_buffer else 2
    budget = _vmem_budget_bytes()
    itemsize = jnp.dtype(x.dtype).itemsize
    row_tile, h_tile, est_bytes = _plan_tiles(rows, Cp, Hp, itemsize, wbuf, budget)
    rows_p = _round_up(rows, row_tile)
    n_row_tiles = rows_p // row_tile
    n_h_tiles = Hp // h_tile
    vmem_limit = int(min(max(est_bytes, 32 << 20), budget))

    # ---- activations: pad only when needed; keep native dtype (cast in-kernel) ----
    x2 = x.reshape(rows, C)
    needs_pad = (Cp != C) or (rows_p != rows)
    if needs_pad:
        x2 = jnp.pad(x2, ((0, rows_p - rows), (0, Cp - C)))

    # ---- parameters: pad (zeros) + bf16 cast for MXU operands.  Jit the whole
    # wrapper so these get constant-folded / hoisted out of the per-call path. ----
    def pad_vec(v, n):
        v = v.reshape(1, -1).astype(jnp.float32)
        if v.shape[1] != n:
            v = jnp.pad(v, ((0, 0), (0, n - v.shape[1])))
        return v

    gamma_p = pad_vec(gamma, Cp)
    beta_p = pad_vec(beta, Cp)
    b1_p = pad_vec(b1, Hp)
    b2_p = pad_vec(b2, Cp)
    w1_p = w1.astype(jnp.float32)
    w2_p = w2.astype(jnp.float32)
    if Cp != C or Hp != H:
        w1_p = jnp.pad(w1_p, ((0, Cp - C), (0, Hp - H)))
        w2_p = jnp.pad(w2_p, ((0, Hp - H), (0, Cp - C)))
    w1_p = w1_p.astype(jnp.bfloat16)
    w2_p = w2_p.astype(jnp.bfloat16)

    def invariant_spec(shape, index_map):
        if use_single_buffer:
            return pl.BlockSpec(shape, index_map, pipeline_mode=pl.Buffered(1))
        return pl.BlockSpec(shape, index_map)

    if n_h_tiles == 1:
        # Fused path: weights DMA'd once, held resident across all row tiles.
        kernel = functools.partial(mlp_block_kernel_fused, true_c=C,
                                   approx_gelu=approximate_gelu)
        grid = (n_row_tiles,)
        row_map = lambda i: (i, 0)
        const_map = lambda i: (0, 0)
        in_specs = [
            pl.BlockSpec((row_tile, Cp), row_map),   # x
            invariant_spec((1, Cp), const_map),      # gamma
            invariant_spec((1, Cp), const_map),      # beta
            invariant_spec((Cp, Hp), const_map),     # w1 (bf16, resident)
            invariant_spec((1, Hp), const_map),      # b1
            invariant_spec((Hp, Cp), const_map),     # w2 (bf16, resident)
            invariant_spec((1, Cp), const_map),      # b2
        ]
        out_spec = pl.BlockSpec((row_tile, Cp), row_map)
        scratch_shapes = []
        dim_sem = ("parallel",)
    else:
        # H-tiled reduction path (very large H only).
        kernel = functools.partial(mlp_block_kernel_htiled, true_c=C,
                                   approx_gelu=approximate_gelu)
        grid = (n_row_tiles, n_h_tiles)
        row_map = lambda i, j: (i, 0)
        const_map = lambda i, j: (0, 0)
        in_specs = [
            pl.BlockSpec((row_tile, Cp), row_map),               # x
            invariant_spec((1, Cp), const_map),                  # gamma
            invariant_spec((1, Cp), const_map),                  # beta
            pl.BlockSpec((Cp, h_tile), lambda i, j: (0, j)),     # w1 chunk (bf16)
            pl.BlockSpec((1, h_tile), lambda i, j: (0, j)),      # b1 chunk
            pl.BlockSpec((h_tile, Cp), lambda i, j: (j, 0)),     # w2 chunk (bf16)
            invariant_spec((1, Cp), const_map),                  # b2
        ]
        out_spec = pl.BlockSpec((row_tile, Cp), row_map)
        scratch_shapes = [
            pltpu.VMEM((row_tile, Cp), jnp.bfloat16),   # cached LayerNorm output
            pltpu.VMEM((row_tile, Cp), jnp.float32),    # fc2 accumulator
        ]
        dim_sem = ("parallel", "arbitrary")

    out = pl.pallas_call(
        kernel,
        out_shape=jax.ShapeDtypeStruct((rows_p, Cp), x.dtype),
        grid_spec=pltpu.PrefetchScalarGridSpec(
            num_scalar_prefetch=0,
            grid=grid,
            in_specs=in_specs,
            out_specs=out_spec,
            scratch_shapes=scratch_shapes,
        ),
        compiler_params=pltpu.CompilerParams(
            dimension_semantics=dim_sem,
            vmem_limit_bytes=vmem_limit,
        ),
    )(x2, gamma_p, beta_p, w1_p, b1_p, w2_p, b2_p)

    if needs_pad:
        out = out[:rows, :C]
    return out.reshape(B, L, C)


if __name__ == "__main__":
    # MLPBlock(dim=32, num_heads=4, input_resolution=(8, 8), mlp_ratio=4.0)
    B, Hres, Wres = 2, 8, 8
    dim = 32
    mlp_ratio = 4.0
    hidden = int(dim * mlp_ratio)
    L = Hres * Wres

    key = jax.random.PRNGKey(0)
    k_x, k_w1, k_b1, k_w2, k_b2 = jax.random.split(key, 5)

    x = jax.random.normal(k_x, (B, L, dim), dtype=jnp.float32)

    # Parameters (shapes follow nn.LayerNorm / nn.Linear; Linear stores (out, in),
    # we pass the transposed (in, out) layout used for x @ W).
    gamma = jnp.ones((dim,), dtype=jnp.float32)
    beta = jnp.zeros((dim,), dtype=jnp.float32)
    lim1 = 1.0 / math.sqrt(dim)
    w1 = jax.random.uniform(k_w1, (dim, hidden), minval=-lim1, maxval=lim1, dtype=jnp.float32)
    b1 = jax.random.uniform(k_b1, (hidden,), minval=-lim1, maxval=lim1, dtype=jnp.float32)
    lim2 = 1.0 / math.sqrt(hidden)
    w2 = jax.random.uniform(k_w2, (hidden, dim), minval=-lim2, maxval=lim2, dtype=jnp.float32)
    b2 = jax.random.uniform(k_b2, (dim,), minval=-lim2, maxval=lim2, dtype=jnp.float32)

    # Jit the wrapper so the parameter pads/casts are fused & hoisted by XLA.
    run = jax.jit(mlp_block)
    out = run(x, gamma, beta, w1, b1, w2, b2)
    jax.block_until_ready(out)

    # Pure-JAX f32 reference (exact erf GELU, matching nn.GELU default).  The
    # kernel uses bf16 MXU operands with f32 accumulation, hence the tolerance.
    xf = x.astype(jnp.float32)
    mean = jnp.mean(xf, axis=-1, keepdims=True)
    var = jnp.mean((xf - mean) ** 2, axis=-1, keepdims=True)
    xn = (xf - mean) / jnp.sqrt(var + LN_EPS) * gamma + beta
    h = xn @ w1 + b1
    h = 0.5 * h * (1.0 + jax.lax.erf(h / math.sqrt(2.0)))
    ref = x + (h @ w2 + b2)

    assert out.shape == x.shape
    assert jnp.allclose(out, ref, atol=2e-2, rtol=2e-2), "mismatch vs reference"
    # TODO(synk): nn.Dropout / DropPath with p=0.0 are identities (inference path); no RNG emitted.
    print("KERNEL_OK")
</pallas_src>

<mosaic_0001>
module attributes {stable_mosaic.version = 11 : i64} {
  func.func @mlp_block_kernel_fused(%arg0: i32, %arg1: memref<64x128xf32, #tpu.memory_space<vmem>>, %arg2: memref<1x128xf32, #tpu.memory_space<vmem>>, %arg3: memref<1x128xf32, #tpu.memory_space<vmem>>, %arg4: memref<128x128xbf16, #tpu.memory_space<vmem>>, %arg5: memref<1x128xf32, #tpu.memory_space<vmem>>, %arg6: memref<128x128xbf16, #tpu.memory_space<vmem>>, %arg7: memref<1x128xf32, #tpu.memory_space<vmem>>, %arg8: memref<64x128xf32, #tpu.memory_space<vmem>>) attributes {dimension_semantics = [#tpu.dimension_semantics<parallel>], iteration_bounds = array<i64: 2>, scalar_prefetch = 0 : i64, scratch_operands = 0 : i64, tpu.core_type = #tpu.core_type<tc>, window_params = [{transform_indices = @transform_0, window_bounds = array<i64: 64, 128>}, {pipeline_mode = #tpu.pipeline_mode<synchronous>, transform_indices = @transform_1, window_bounds = array<i64: 1, 128>}, {pipeline_mode = #tpu.pipeline_mode<synchronous>, transform_indices = @transform_2, window_bounds = array<i64: 1, 128>}, {pipeline_mode = #tpu.pipeline_mode<synchronous>, transform_indices = @transform_3, window_bounds = array<i64: 128, 128>}, {pipeline_mode = #tpu.pipeline_mode<synchronous>, transform_indices = @transform_4, window_bounds = array<i64: 1, 128>}, {pipeline_mode = #tpu.pipeline_mode<synchronous>, transform_indices = @transform_5, window_bounds = array<i64: 128, 128>}, {pipeline_mode = #tpu.pipeline_mode<synchronous>, transform_indices = @transform_6, window_bounds = array<i64: 1, 128>}, {transform_indices = @transform_7, window_bounds = array<i64: 64, 128>}]} {
    %c0 = arith.constant 0 : index
    %c0_0 = arith.constant 0 : index
    %0 = vector.load %arg1[%c0, %c0_0] : memref<64x128xf32, #tpu.memory_space<vmem>>, vector<64x128xf32>
    %c0_1 = arith.constant 0 : index
    %c0_2 = arith.constant 0 : index
    %1 = vector.load %arg2[%c0_1, %c0_2] : memref<1x128xf32, #tpu.memory_space<vmem>>, vector<1x128xf32>
    %c0_3 = arith.constant 0 : index
    %c0_4 = arith.constant 0 : index
    %2 = vector.load %arg3[%c0_3, %c0_4] : memref<1x128xf32, #tpu.memory_space<vmem>>, vector<1x128xf32>
    %cst = arith.constant dense<0.000000e+00> : vector<64xf32>
    %3 = vector.multi_reduction <add>, %0, %cst [1] : vector<64x128xf32> to vector<64xf32>
    %4 = vector.shape_cast %3 : vector<64xf32> to vector<64x1xf32>
    %cst_5 = arith.constant 3.125000e-02 : f32
    %5 = vector.broadcast %cst_5 : f32 to vector<64x1xf32>
    %6 = arith.mulf %4, %5 : vector<64x1xf32>
    %7 = vector.broadcast %6 : vector<64x1xf32> to vector<64x128xf32>
    %8 = arith.subf %0, %7 : vector<64x128xf32>
    %9 = tpu.iota {dimensions = array<i32: 1>} : vector<1x128xi32>
    %c32_i32 = arith.constant 32 : i32
    %10 = vector.broadcast %c32_i32 : i32 to vector<1x128xi32>
    %11 = arith.cmpi slt, %9, %10 : vector<1x128xi32>
    %12 = arith.extui %11 : vector<1x128xi1> to vector<1x128xi32>
    %13 = arith.sitofp %12 : vector<1x128xi32> to vector<1x128xf32>
    %14 = vector.broadcast %13 : vector<1x128xf32> to vector<64x128xf32>
    %15 = arith.mulf %8, %14 : vector<64x128xf32>
    %16 = arith.mulf %15, %15 : vector<64x128xf32>
    %cst_6 = arith.constant dense<0.000000e+00> : vector<64xf32>
    %17 = vector.multi_reduction <add>, %16, %cst_6 [1] : vector<64x128xf32> to vector<64xf32>
    %18 = vector.shape_cast %17 : vector<64xf32> to vector<64x1xf32>
    %cst_7 = arith.constant 3.125000e-02 : f32
    %19 = vector.broadcast %cst_7 : f32 to vector<64x1xf32>
    %20 = arith.mulf %18, %19 : vector<64x1xf32>
    %cst_8 = arith.constant 9.99999974E-6 : f32
    %21 = vector.broadcast %cst_8 : f32 to vector<64x1xf32>
    %22 = arith.addf %20, %21 : vector<64x1xf32>
    %23 = math.rsqrt %22 : vector<64x1xf32>
    %24 = vector.broadcast %23 : vector<64x1xf32> to vector<64x128xf32>
    %25 = arith.mulf %15, %24 : vector<64x128xf32>
    %26 = vector.broadcast %1 : vector<1x128xf32> to vector<64x128xf32>
    %27 = arith.mulf %25, %26 : vector<64x128xf32>
    %28 = vector.broadcast %2 : vector<1x128xf32> to vector<64x128xf32>
    %29 = arith.addf %27, %28 : vector<64x128xf32>
    %30 = arith.truncf %29 : vector<64x128xf32> to vector<64x128xbf16>
    %c0_9 = arith.constant 0 : index
    %c0_10 = arith.constant 0 : index
    %31 = vector.load %arg4[%c0_9, %c0_10] : memref<128x128xbf16, #tpu.memory_space<vmem>>, vector<128x128xbf16>
    %cst_11 = arith.constant dense<0.000000e+00> : vector<64x128xf32>
    %32 = tpu.matmul %30, %31, %cst_11 {dimension_numbers = #tpu.dot_dimension_numbers<[1], [0], [0], [1], [0, 0, 1, 1], [], []>} : vector<64x128xbf16>, vector<128x128xbf16>, vector<64x128xf32> -> vector<64x128xf32>
    %c0_12 = arith.constant 0 : index
    %c0_13 = arith.constant 0 : index
    %33 = vector.load %arg5[%c0_12, %c0_13] : memref<1x128xf32, #tpu.memory_space<vmem>>, vector<1x128xf32>
    %34 = vector.broadcast %33 : vector<1x128xf32> to vector<64x128xf32>
    %35 = arith.addf %32, %34 : vector<64x128xf32>
    %cst_14 = arith.constant 5.000000e-01 : f32
    %36 = vector.broadcast %cst_14 : f32 to vector<64x128xf32>
    %37 = arith.mulf %36, %35 : vector<64x128xf32>
    %cst_15 = arith.constant 0.707106769 : f32
    %38 = vector.broadcast %cst_15 : f32 to vector<64x128xf32>
    %39 = arith.mulf %35, %38 : vector<64x128xf32>
    %40 = math.erf %39 : vector<64x128xf32>
    %cst_16 = arith.constant 1.000000e+00 : f32
    %41 = vector.broadcast %cst_16 : f32 to vector<64x128xf32>
    %42 = arith.addf %41, %40 : vector<64x128xf32>
    %43 = arith.mulf %37, %42 : vector<64x128xf32>
    %44 = arith.truncf %43 : vector<64x128xf32> to vector<64x128xbf16>
    %c0_17 = arith.constant 0 : index
    %c0_18 = arith.constant 0 : index
    %45 = vector.load %arg6[%c0_17, %c0_18] : memref<128x128xbf16, #tpu.memory_space<vmem>>, vector<128x128xbf16>
    %cst_19 = arith.constant dense<0.000000e+00> : vector<64x128xf32>
    %46 = tpu.matmul %44, %45, %cst_19 {dimension_numbers = #tpu.dot_dimension_numbers<[1], [0], [0], [1], [0, 0, 1, 1], [], []>} : vector<64x128xbf16>, vector<128x128xbf16>, vector<64x128xf32> -> vector<64x128xf32>
    %c0_20 = arith.constant 0 : index
    %c0_21 = arith.constant 0 : index
    %47 = vector.load %arg7[%c0_20, %c0_21] : memref<1x128xf32, #tpu.memory_space<vmem>>, vector<1x128xf32>
    %48 = vector.broadcast %47 : vector<1x128xf32> to vector<64x128xf32>
    %49 = arith.addf %46, %48 : vector<64x128xf32>
    %50 = arith.addf %49, %0 : vector<64x128xf32>
    %c0_22 = arith.constant 0 : index
    %c0_23 = arith.constant 0 : index
    %51 = vector.load %arg8[%c0_22, %c0_23] : memref<64x128xf32, #tpu.memory_space<vmem>>, vector<64x128xf32>
    tpu.vector_store %arg8[%c0_22, %c0_23], %50 {strides = array<i32>} : memref<64x128xf32, #tpu.memory_space<vmem>>, vector<64x128xf32>,
    return
  }
  func.func @transform_0(%arg0: i32) -> (i32, i32) {
    %c0_i32 = arith.constant 0 : i32
    %c0_i32_0 = arith.constant 0 : i32
    return %arg0, %c0_i32 : i32, i32
  }
  func.func @transform_1(%arg0: i32) -> (i32, i32) {
    %c0_i32 = arith.constant 0 : i32
    %c0_i32_0 = arith.constant 0 : i32
    %c0_i32_1 = arith.constant 0 : i32
    return %c0_i32, %c0_i32_0 : i32, i32
  }
  func.func @transform_2(%arg0: i32) -> (i32, i32) {
    %c0_i32 = arith.constant 0 : i32
    %c0_i32_0 = arith.constant 0 : i32
    %c0_i32_1 = arith.constant 0 : i32
    return %c0_i32, %c0_i32_0 : i32, i32
  }
  func.func @transform_3(%arg0: i32) -> (i32, i32) {
    %c0_i32 = arith.constant 0 : i32
    %c0_i32_0 = arith.constant 0 : i32
    %c0_i32_1 = arith.constant 0 : i32
    return %c0_i32, %c0_i32_0 : i32, i32
  }
  func.func @transform_4(%arg0: i32) -> (i32, i32) {
    %c0_i32 = arith.constant 0 : i32
    %c0_i32_0 = arith.constant 0 : i32
    %c0_i32_1 = arith.constant 0 : i32
    return %c0_i32, %c0_i32_0 : i32, i32
  }
  func.func @transform_5(%arg0: i32) -> (i32, i32) {
    %c0_i32 = arith.constant 0 : i32
    %c0_i32_0 = arith.constant 0 : i32
    %c0_i32_1 = arith.constant 0 : i32
    return %c0_i32, %c0_i32_0 : i32, i32
  }
  func.func @transform_6(%arg0: i32) -> (i32, i32) {
    %c0_i32 = arith.constant 0 : i32
    %c0_i32_0 = arith.constant 0 : i32
    %c0_i32_1 = arith.constant 0 : i32
    return %c0_i32, %c0_i32_0 : i32, i32
  }
  func.func @transform_7(%arg0: i32) -> (i32, i32) {
    %c0_i32 = arith.constant 0 : i32
    %c0_i32_0 = arith.constant 0 : i32
    return %arg0, %c0_i32 : i32, i32
  }
}

</mosaic_0001>

<bundles_post_ra>
// kernel: mlp_block.1
= control target key start
LH: loop header
LB: loop body
LE: loop exit
PB: predicated region body
PF: predicated region fallthrough
CT: control target
= control target key end

     0   :  { %s1024_s24 = smov 0   ;;  %s1188_s0 = inlined_call_operand.vmem [shape: f32[128,128], index: 0, kind: input, shape index: {}]   ;;  %s1189_s1 = inlined_call_operand.vmem [shape: f32[1,128], index: 1, kind: input, shape index: {}]   ;;  %s1190_s2 = inlined_call_operand.vmem [shape: f32[1,128], index: 2, kind: input, shape index: {}]   ;;  %s1191_s3 = inlined_call_operand.vmem [shape: bf16[128,128], index: 3, kind: input, shape index: {}]   ;;  %s1192_s4 = inlined_call_operand.vmem [shape: f32[1,128], index: 4, kind: input, shape index: {}]   ;;  %s1193_s5 = inlined_call_operand.vmem [shape: bf16[128,128], index: 5, kind: input, shape index: {}]   ;;  %s1194_s6 = inlined_call_operand.vmem [shape: f32[1,128], index: 6, kind: input, shape index: {}]   ;;  %s1195_s7 = inlined_call_operand.vmem [shape: f32[128,128], index: 7, kind: output, shape index: {}]  }
   0x1 LB: > { %s814_s25 = sadd.s32 4294967295, %s981_s24   ;;  %p818_p0 = scmp.ge.s32.totalorder %s981_s24, 1  ;;  %s981_s24 = sphi %s1024_s24, %s17_s24  }
   0x2   : > { %p238_p1 = scmp.lt.s32.totalorder %s981_s24, 3 }
   0x4   : > { %p239_p2 = pnand %p818_p0, %p238_p1 }
   0x5   : > { %s819_s26 = sshll.u32 (!%p239_p2), %s814_s25, 3  ;;  %v927_v8 = vld [vmem:[%s1191_s3] sm:$0xff] (!%p239_p2)   ;;  %v325_v9 = vlaneseq (!%p239_p2)  ;;  %v983_v15 = vmov (!%p239_p2), 0.0   ;;  %v928_v53 = vld [vmem:[%s1191_s3 + $0x8] sm:$0xff] (!%p239_p2)   ;;  %v929_v54 = vld [vmem:[%s1191_s3 + $0x10] sm:$0xff] (!%p239_p2)  }
   0x6   : > { %242 = sbr.rel (%p239_p2) target bundleno = 805 (0x325), region = 48  ;;  %p271_p3 = scmp.lt.s32.totalorder (!%p239_p2), %s819_s26, 15  ;;  %870 = vmatprep.subr.bf16.mxu0 (!%p239_p2), %v927_v8  ;;  %v930_v55 = vld [vmem:[%s1191_s3 + $0x18] sm:$0xff] (!%p239_p2)   ;;  %v931_v56 = vld [vmem:[%s1191_s3 + $0x20] sm:$0xff] (!%p239_p2)   ;;  %v932_v57 = vld [vmem:[%s1191_s3 + $0x28] sm:$0xff] (!%p239_p2)  }
   0x7   : > { %871 = vmatpush3.bf16.msra.mxu0 (!%p239_p2), %v927_v8  ;;  %v326_v10 = vand.u32 (!%p239_p2), 127, %v325_v9  ;;  %v933_v58 = vld [vmem:[%s1191_s3 + $0x30] sm:$0xff] (!%p239_p2)   ;;  %v934_v59 = vld [vmem:[%s1191_s3 + $0x38] sm:$0xff] (!%p239_p2)   ;;  %v935_v60 = vld [vmem:[%s1193_s5] sm:$0xff] (!%p239_p2)  }
   0x8   : > { %872 = vmatprep.subr.bf16.mxu0 (!%p239_p2), %v928_v53  ;;  %v936_v61 = vld [vmem:[%s1193_s5 + $0x8] sm:$0xff] (!%p239_p2)   ;;  %894 = vmatprep.subr.bf16.mxu1 (!%p239_p2), %v935_v60 }
   0x9   : > { %vm327_vm0 = vcmp.lt.s32.totalorder (!%p239_p2), %v326_v10, 32  ;;  %895 = vmatpush3.bf16.msra.mxu1 (!%p239_p2), %v935_v60 }
   0xa   : > { %v823_v16 = vsel (!%p239_p2), %vm327_vm0, 1.0, %v983_v15  ;;  %896 = vmatprep.subr.bf16.mxu1 (!%p239_p2), %v936_v61 }
   0xb   : > { %873 = vmatpush3.bf16.msra.mxu0 (!%p239_p2), %v928_v53 }
   0xc   : > { %874 = vmatprep.subr.bf16.mxu0 (!%p239_p2), %v929_v54 }
   0xd   : > { %s1197_s26 = smov (!%p271_p3, %s819_s26), 15  ;;  %897 = vmatpush3.bf16.msra.mxu1 %v936_v61 }
   0xe   : > { %s820_s27 = sshll.u32 %s1197_s26, 3 }
   0xf   : > { %s274_s30 = scalar_lea.vmem %s1188_s0, %s820_s27  ;;  %875 = vmatpush3.bf16.msra.mxu0 %v929_v54  ;;  %s280_s10 = scalar_lea.vmem %s1195_s7, %s820_s27 }
  0x10   : > { %v1040_v0 = vld [vmem:[%s274_s30] sm:$0xff]  ;;  %v1042_v1 = vld [vmem:[%s274_s30 + $0x10] sm:$0xff]  ;;  %v1046_v2 = vld [vmem:[%s274_s30 + $0x8] sm:$0xff]  ;;  %876 = vmatprep.subr.bf16.mxu0 %v930_v55 }
  0x11   : > { %293 = vadd.xlane.f32.xlu0 %v1040_v0  ;;  %297 = vadd.xlane.f32.xlu1 %v1042_v1  ;;  %v1048_v3 = vld [vmem:[%s274_s30 + $0x18] sm:$0xff]  ;;  %v1050_v4 = vld [vmem:[%s274_s30 + $0x20] sm:$0xff]  ;;  %v1052_v5 = vld [vmem:[%s274_s30 + $0x28] sm:$0xff] }
  0x12   : > { %v1058_v6 = vld [vmem:[%s274_s30 + $0x30] sm:$0xff]  ;;  %v1060_v7 = vld [vmem:[%s274_s30 + $0x38] sm:$0xff] }
  0x13   : > { %877 = vmatpush3.bf16.msra.mxu0 %v930_v55 }
  0x14   : > { %878 = vmatprep.subr.bf16.mxu0 %v931_v56 }
  0x15   : > { %295 = vadd.xlane.f32.xlu0 %v1046_v2  ;;  %299 = vadd.xlane.f32.xlu1 %v1048_v3 }
  0x17   : > { %879 = vmatpush3.bf16.msra.mxu0 %v931_v56 }
  0x18   : > { %880 = vmatprep.subr.bf16.mxu0 %v932_v57 }
  0x19   : > { %301 = vadd.xlane.f32.xlu0 %v1050_v4  ;;  %303 = vadd.xlane.f32.xlu1 %v1052_v5 }
  0x1b   : > { %881 = vmatpush3.bf16.msra.mxu0 %v932_v57 }
  0x1c   : > { %882 = vmatprep.subr.bf16.mxu0 %v933_v58 }
  0x1d   : > { %305 = vadd.xlane.f32.xlu0 %v1058_v6  ;;  %307 = vadd.xlane.f32.xlu1 %v1060_v7 }
  0x1f   : > { %883 = vmatpush3.bf16.msra.mxu0 %v933_v58 }
  0x20   : > { %884 = vmatprep.subr.bf16.mxu0 %v934_v59 }
  0x23   : > { %885 = vmatpush3.bf16.msra.mxu0 %v934_v59 }
  0x9e   : > { %v294_v11 = vpop.xlane.xlu0 %293  ;;  %v298_v12 = vpop.xlane.xlu1 %297 }
  0x9f   : > { %v309_v13 = vmul.f32 0.03125, %v294_v11  ;;  %v311_v14 = vmul.f32 0.03125, %v298_v12 }
  0xa1   : > { %v317_v17 = vsub.f32 %v1040_v0, %v309_v13  ;;  %v319_v18 = vsub.f32 %v1042_v1, %v311_v14 }
  0xa2   : > { %v296_v19 = vpop.xlane.xlu0 %295  ;;  %v300_v20 = vpop.xlane.xlu1 %299 }
  0xa3   : > { %v310_v21 = vmul.f32 0.03125, %v296_v19  ;;  %v312_v22 = vmul.f32 0.03125, %v300_v20  ;;  %v1069_v23 = vmul.f32 %v823_v16, %v317_v17  ;;  %v1071_v24 = vmul.f32 %v823_v16, %v319_v18 }
  0xa5   : > { %v318_v25 = vsub.f32 %v1046_v2, %v310_v21  ;;  %v320_v26 = vsub.f32 %v1048_v3, %v312_v22  ;;  %v338_v27 = vmul.f32 %v1069_v23, %v1069_v23  ;;  %v340_v30 = vmul.f32 %v1071_v24, %v1071_v24 }
  0xa6   : > { %v302_v28 = vpop.xlane.xlu0 %301  ;;  %v304_v29 = vpop.xlane.xlu1 %303 }
  0xa7   : > { %v313_v31 = vmul.f32 0.03125, %v302_v28  ;;  %346 = vadd.xlane.f32.xlu0 %v338_v27  ;;  %v314_v32 = vmul.f32 0.03125, %v304_v29  ;;  %v1079_v33 = vmul.f32 %v823_v16, %v318_v25  ;;  %v1081_v34 = vmul.f32 %v823_v16, %v320_v26 }
  0xa9   : > { %v321_v35 = vsub.f32 %v1050_v4, %v313_v31  ;;  %v322_v36 = vsub.f32 %v1052_v5, %v314_v32  ;;  %v339_v37 = vmul.f32 %v1079_v33, %v1079_v33  ;;  %v341_v40 = vmul.f32 %v1081_v34, %v1081_v34 }
  0xaa   : > { %v306_v38 = vpop.xlane.xlu0 %305  ;;  %v308_v39 = vpop.xlane.xlu1 %307 }
  0xab   : > { %v315_v41 = vmul.f32 0.03125, %v306_v38  ;;  %350 = vadd.xlane.f32.xlu0 %v340_v30  ;;  %348 = vadd.xlane.f32.xlu1 %v339_v37  ;;  %v316_v42 = vmul.f32 0.03125, %v308_v39  ;;  %v1089_v43 = vmul.f32 %v823_v16, %v321_v35  ;;  %v1091_v44 = vmul.f32 %v823_v16, %v322_v36  ;;  %v824_v35 = vld [vmem:[%s1189_s1] ss:$0 sm:$0xff] }
  0xad   : > { %v323_v45 = vsub.f32 %v1058_v6, %v315_v41  ;;  %v324_v46 = vsub.f32 %v1060_v7, %v316_v42  ;;  %v342_v47 = vmul.f32 %v1089_v43, %v1089_v43  ;;  %v343_v48 = vmul.f32 %v1091_v44, %v1091_v44  ;;  %v825_v41 = vld [vmem:[%s1190_s2] ss:$0 sm:$0xff] }
  0xaf   : > { %352 = vadd.xlane.f32.xlu1 %v341_v40  ;;  %354 = vadd.xlane.f32.xlu0 %v342_v47  ;;  %v1099_v49 = vmul.f32 %v823_v16, %v323_v45  ;;  %v1101_v50 = vmul.f32 %v823_v16, %v324_v46 }
  0xb1   : > { %v344_v51 = vmul.f32 %v1099_v49, %v1099_v49  ;;  %v345_v52 = vmul.f32 %v1101_v50, %v1101_v50 }
  0xb3   : > { %356 = vadd.xlane.f32.xlu1 %v343_v48  ;;  %358 = vadd.xlane.f32.xlu0 %v344_v51 }
  0xb7   : > { %360 = vadd.xlane.f32.xlu1 %v345_v52 }
 0x134   : > { %v347_v62 = vpop.xlane.xlu0 %346 }
 0x135   : > { %v362_v63 = vmul.f32 0.03125, %v347_v62 }
 0x137   : > { %v370_v8 = vadd.f32 1e-05, %v362_v63 }
 0x138   : > { %v349_v9 = vpop.xlane.xlu1 %348  ;;  %v351_v10 = vpop.xlane.xlu0 %350 }
 0x139   : > { %943 = vrsqrt.f32 %v370_v8  ;;  %v363_v11 = vmul.f32 0.03125, %v349_v9  ;;  %v364_v12 = vmul.f32 0.03125, %v351_v10 }
 0x13b   : > { %v371_v13 = vadd.f32 1e-05, %v363_v11  ;;  %v372_v14 = vadd.f32 1e-05, %v364_v12 }
 0x13c   : > { %v353_v15 = vpop.xlane.xlu1 %352  ;;  %v355_v16 = vpop.xlane.xlu0 %354 }
 0x13d   : > { %945 = vrsqrt.f32 %v371_v13  ;;  %v365_v17 = vmul.f32 0.03125, %v353_v15  ;;  %v366_v18 = vmul.f32 0.03125, %v355_v16  ;;  %v940_v15 = vld [vmem:[%s1193_s5 + $0x28] sm:$0xff]   ;;  %v941_v16 = vld [vmem:[%s1193_s5 + $0x30] sm:$0xff]  }
 0x13e   : > { %947 = vrsqrt.f32 %v372_v14 }
 0x13f   : > { %v373_v19 = vadd.f32 1e-05, %v365_v17  ;;  %v374_v20 = vadd.f32 1e-05, %v366_v18  ;;  %v942_v17 = vld [vmem:[%s1193_s5 + $0x38] sm:$0xff]  }
 0x140   : > { %v357_v21 = vpop.xlane.xlu1 %356  ;;  %v359_v22 = vpop.xlane.xlu0 %358  ;;  %v826_v18 = vld [vmem:[%s1192_s4] ss:$0 sm:$0xff] }
 0x141   : > { %949 = vrsqrt.f32 %v373_v19  ;;  %v367_v25 = vmul.f32 0.03125, %v357_v21  ;;  %v368_v26 = vmul.f32 0.03125, %v359_v22 }
 0x142   : > { %951 = vrsqrt.f32 %v374_v20 }
 0x143   : > { %v944_v27 = vpop.eup %943  ;;  %v375_v28 = vadd.f32 1e-05, %v367_v25  ;;  %v376_v29 = vadd.f32 1e-05, %v368_v26 }
 0x144   : > { %v361_v30 = vpop.xlane.xlu1 %360  ;;  %v386_v31 = vmul.f32 %v944_v27, %v1069_v23 }
 0x145   : > { %953 = vrsqrt.f32 %v375_v28  ;;  %v369_v32 = vmul.f32 0.03125, %v361_v30 }
 0x146   : > { %955 = vrsqrt.f32 %v376_v29  ;;  %v400_v40 = vmul.f32 %v824_v35, %v386_v31 }
 0x147   : > { %v946_v36 = vpop.eup %945  ;;  %v377_v37 = vadd.f32 1e-05, %v369_v32 }
 0x148   : > { %v948_v38 = vpop.eup %947  ;;  %v387_v39 = vmul.f32 %v946_v36, %v1079_v33  ;;  %v414_v47 = vadd.f32 %v825_v41, %v400_v40 }
 0x149   : > { %957 = vrsqrt.f32 %v377_v37  ;;  %v388_v23 = vmul.f32 %v948_v38, %v1071_v24 }
 0x14a   : > { %v401_v42 = vmul.f32 %v824_v35, %v387_v39 }
 0x14b   : > { %v950_v45 = vpop.eup %949  ;;  %v402_v52 = vmul.f32 %v824_v35, %v388_v23 }
 0x14c   : > { %v952_v46 = vpop.eup %951  ;;  %v415_v48 = vadd.f32 %v825_v41, %v401_v42  ;;  %v389_v51 = vmul.f32 %v950_v45, %v1081_v34 }
 0x14d   : > { %v390_v53 = vmul.f32 %v952_v46, %v1089_v43  ;;  %v416_v57 = vadd.f32 %v825_v41, %v402_v52 }
 0x14e   : > { %v422_v54 = vpack.c.bf16 %v415_v48, %v414_v47  ;;  %v403_v33 = vmul.f32 %v824_v35, %v389_v51 }
 0x14f   : > { %v954_v55 = vpop.eup %953  ;;  %v404_v24 = vmul.f32 %v824_v35, %v390_v53 }
 0x150   : > { %v956_v56 = vpop.eup %955  ;;  %886 = vmatprep.mubr.bf16.mxu0 %v422_v54  ;;  %v417_v58 = vadd.f32 %v825_v41, %v403_v33  ;;  %v391_v59 = vmul.f32 %v954_v55, %v1091_v44  ;;  %v937_v44 = vld [vmem:[%s1193_s5 + $0x10] sm:$0xff]  }
 0x151   : > { %v392_v60 = vmul.f32 %v956_v56, %v1099_v49  ;;  %v418_v34 = vadd.f32 %v825_v41, %v404_v24  ;;  %898 = vmatprep.subr.bf16.mxu1 %v937_v44  ;;  %v938_v49 = vld [vmem:[%s1193_s5 + $0x18] sm:$0xff]  }
 0x152   : > { %v423_v61 = vpack.c.bf16 %v417_v58, %v416_v57  ;;  %v405_v62 = vmul.f32 %v824_v35, %v391_v59  ;;  %899 = vmatpush3.bf16.msra.mxu1 %v937_v44 }
 0x153   : > { %v958_v63 = vpop.eup %957  ;;  %v406_v9 = vmul.f32 %v824_v35, %v392_v60  ;;  %900 = vmatprep.subr.bf16.mxu1 %v938_v49 }
 0x154   : > { %887 = vmatmul.mubr.bf16.vlgmr.msra.gmra.mrb[0].mxu0 %v423_v61  ;;  %v419_v8 = vadd.f32 %v825_v41, %v405_v62  ;;  %v393_v43 = vmul.f32 %v958_v63, %v1101_v50  ;;  %v939_v50 = vld [vmem:[%s1193_s5 + $0x20] sm:$0xff]  }
 0x155   : > { %v420_v12 = vadd.f32 %v825_v41, %v406_v9 }
 0x156   : > { %v424_v10 = vpack.c.bf16 %v419_v8, %v418_v34  ;;  %v407_v11 = vmul.f32 %v824_v35, %v393_v43  ;;  %901 = vmatpush3.bf16.msra.mxu1 %v938_v49 }
 0x157   : > { %902 = vmatprep.subr.bf16.mxu1 %v939_v50 }
 0x158   : > { %890 = vmatprep.mubr.bf16.mxu0 %v424_v10  ;;  %v421_v13 = vadd.f32 %v825_v41, %v407_v11 }
 0x15a   : > { %v425_v14 = vpack.c.bf16 %v421_v13, %v420_v12  ;;  %903 = vmatpush3.bf16.msra.mxu1 %v939_v50 }
 0x15b   : > { %904 = vmatprep.subr.bf16.mxu1 %v940_v15 }
 0x15c   : > { %891 = vmatmul.mubr.bf16.gmra.mrb[4].mxu0 %v425_v14 }
 0x15e   : > { %905 = vmatpush3.bf16.msra.mxu1 %v940_v15 }
 0x15f   : > { %906 = vmatprep.subr.bf16.mxu1 %v941_v16 }
 0x162   : > { %907 = vmatpush3.bf16.msra.mxu1 %v941_v16 }
 0x163   : > { %908 = vmatprep.subr.bf16.mxu1 %v942_v17 }
 0x166   : > { %909 = vmatpush3.bf16.msra.mxu1 %v942_v17 }
 0x227   : > { %v888_v19 = vpop.f32.mrb[0].mxu0 }
 0x228   : > { %v540_v20 = vadd.f32 %v888_v19, %v826_v18  ;;  %v531_v21 = vpop.f32.mrb[1].mxu0 }
 0x229   : > { %v532_v22 = vadd.f32 %v826_v18, %v531_v21  ;;  %v889_v25 = vpop.f32.mrb[2].mxu0 }
 0x22a   : > { %v572_v26 = vmul.f32 0.70710677, %v540_v20  ;;  %v543_v27 = vadd.f32 %v889_v25, %v826_v18  ;;  %v534_v28 = vpop.f32.mrb[3].mxu0  ;;  %v564_v55 = vmul.f32 0.5, %v540_v20  ;;  %v835_v25 = vld [vmem:[%s1194_s6] ss:$0 sm:$0xff] }
 0x22b   : > { %v570_v29 = vmul.f32 0.70710677, %v532_v22  ;;  %v535_v30 = vadd.f32 %v826_v18, %v534_v28  ;;  %v562_v58 = vmul.f32 0.5, %v532_v22 }
 0x22c   : > { %959 = verf.f32 %v572_v26  ;;  %v573_v31 = vmul.f32 0.70710677, %v543_v27  ;;  %v565_v56 = vmul.f32 0.5, %v543_v27 }
 0x22d   : > { %961 = verf.f32 %v570_v29  ;;  %v571_v32 = vmul.f32 0.70710677, %v535_v30  ;;  %v563_v59 = vmul.f32 0.5, %v535_v30 }
 0x22e   : > { %963 = verf.f32 %v573_v31 }
 0x22f   : > { %965 = verf.f32 %v571_v32  ;;  %v892_v35 = vpop.f32.mrb[4].mxu0 }
 0x230   : > { %v556_v36 = vadd.f32 %v892_v35, %v826_v18  ;;  %v547_v37 = vpop.f32.mrb[5].mxu0 }
 0x231   : > { %v548_v38 = vadd.f32 %v826_v18, %v547_v37  ;;  %v893_v39 = vpop.f32.mrb[6].mxu0 }
 0x232   : > { %v576_v40 = vmul.f32 0.70710677, %v556_v36  ;;  %v559_v41 = vadd.f32 %v893_v39, %v826_v18  ;;  %v550_v23 = vpop.f32.mrb[7].mxu0  ;;  %v568_v14 = vmul.f32 0.5, %v556_v36 }
 0x233   : > { %v574_v42 = vmul.f32 0.70710677, %v548_v38  ;;  %v551_v45 = vadd.f32 %v826_v18, %v550_v23  ;;  %v566_v50 = vmul.f32 0.5, %v548_v38 }
 0x234   : > { %967 = verf.f32 %v576_v40  ;;  %v577_v46 = vmul.f32 0.70710677, %v559_v41  ;;  %v569_v44 = vmul.f32 0.5, %v559_v41 }
 0x235   : > { %969 = verf.f32 %v574_v42  ;;  %v575_v47 = vmul.f32 0.70710677, %v551_v45  ;;  %v567_v15 = vmul.f32 0.5, %v551_v45 }
 0x236   : > { %v960_v48 = vpop.eup %959  ;;  %971 = verf.f32 %v577_v46 }
 0x237   : > { %v962_v51 = vpop.eup %961  ;;  %v588_v52 = vadd.f32 1.0, %v960_v48  ;;  %973 = verf.f32 %v575_v47 }
 0x238   : > { %v964_v53 = vpop.eup %963  ;;  %v586_v54 = vadd.f32 1.0, %v962_v51 }
 0x239   : > { %v966_v33 = vpop.eup %965  ;;  %v589_v57 = vadd.f32 1.0, %v964_v53  ;;  %v596_v60 = vmul.f32 %v588_v52, %v564_v55 }
 0x23a   : > { %v587_v24 = vadd.f32 1.0, %v966_v33  ;;  %v594_v62 = vmul.f32 %v586_v54, %v562_v58 }
 0x23b   : > { %v597_v61 = vmul.f32 %v589_v57, %v565_v56 }
 0x23c   : > { %v595_v63 = vmul.f32 %v587_v24, %v563_v59 }
 0x23d   : > { %v603_v34 = vpack.c.bf16 %v597_v61, %v596_v60 }
 0x23e   : > { %v968_v8 = vpop.eup %967  ;;  %v602_v43 = vpack.c.bf16 %v595_v63, %v594_v62 }
 0x23f   : > { %v970_v9 = vpop.eup %969  ;;  %v592_v10 = vadd.f32 1.0, %v968_v8 }
 0x240   : > { %v972_v11 = vpop.eup %971  ;;  %v590_v12 = vadd.f32 1.0, %v970_v9  ;;  %910 = vmatprep.mubr.bf16.mxu1 %v602_v43 }
 0x241   : > { %v974_v13 = vpop.eup %973  ;;  %v593_v49 = vadd.f32 1.0, %v972_v11  ;;  %911 = vmatmul.mubr.bf16.vlgmr.msra.gmra.mrb[0].mxu1 %v603_v34  ;;  %v600_v17 = vmul.f32 %v592_v10, %v568_v14 }
 0x242   : > { %v591_v16 = vadd.f32 1.0, %v974_v13  ;;  %v598_v19 = vmul.f32 %v590_v12, %v566_v50 }
 0x243   : > { %v601_v18 = vmul.f32 %v593_v49, %v569_v44 }
 0x244   : > { %v599_v20 = vmul.f32 %v591_v16, %v567_v15 }
 0x245   : > { %v605_v21 = vpack.c.bf16 %v601_v18, %v600_v17 }
 0x246   : > { %v604_v22 = vpack.c.bf16 %v599_v20, %v598_v19 }
 0x248   : > { %914 = vmatprep.mubr.bf16.mxu1 %v604_v22 }
 0x249   : > { %915 = vmatmul.mubr.bf16.gmra.mrb[4].mxu1 %v605_v21 }
 0x314   : > { %v912_v26 = vpop.f32.mrb[0].mxu1 }
 0x315   : > { %v720_v27 = vadd.f32 %v912_v26, %v835_v25  ;;  %v711_v28 = vpop.f32.mrb[1].mxu1 }
 0x316   : > { %v712_v29 = vadd.f32 %v835_v25, %v711_v28  ;;  %v913_v30 = vpop.f32.mrb[2].mxu1 }
 0x317   : > { %v744_v31 = vadd.f32 %v720_v27, %v1042_v1  ;;  %v723_v32 = vadd.f32 %v913_v30, %v835_v25  ;;  %v714_v35 = vpop.f32.mrb[3].mxu1 }
 0x318   : > { %v742_v36 = vadd.f32 %v712_v29, %v1040_v0  ;;  %v715_v37 = vadd.f32 %v835_v25, %v714_v35 }
 0x319   : > { %752 = vst [vmem:[%s280_s10 + $0x10] sm:$0xff] %v744_v31  ;;  %v745_v38 = vadd.f32 %v723_v32, %v1048_v3 }
 0x31a   : > { %750 = vst [vmem:[%s280_s10] sm:$0xff] %v742_v36  ;;  %v743_v39 = vadd.f32 %v715_v37, %v1046_v2 }
 0x31b   : > { %753 = vst [vmem:[%s280_s10 + $0x18] sm:$0xff] %v745_v38 }
 0x31c   : > { %751 = vst [vmem:[%s280_s10 + $0x8] sm:$0xff] %v743_v39  ;;  %v916_v40 = vpop.f32.mrb[4].mxu1 }
 0x31d   : > { %v736_v41 = vadd.f32 %v916_v40, %v835_v25  ;;  %v727_v23 = vpop.f32.mrb[5].mxu1 }
 0x31e   : > { %v728_v42 = vadd.f32 %v835_v25, %v727_v23  ;;  %v917_v45 = vpop.f32.mrb[6].mxu1 }
 0x31f   : > { %v748_v1 = vadd.f32 %v736_v41, %v1058_v6  ;;  %v739_v46 = vadd.f32 %v917_v45, %v835_v25  ;;  %v730_v47 = vpop.f32.mrb[7].mxu1 }
 0x320   : > { %v746_v0 = vadd.f32 %v728_v42, %v1050_v4  ;;  %v731_v48 = vadd.f32 %v835_v25, %v730_v47 }
 0x321   : > { %756 = vst [vmem:[%s280_s10 + $0x30] sm:$0xff] %v748_v1  ;;  %v749_v3 = vadd.f32 %v739_v46, %v1060_v7 }
 0x322   : > { %754 = vst [vmem:[%s280_s10 + $0x20] sm:$0xff] %v746_v0  ;;  %v747_v2 = vadd.f32 %v731_v48, %v1052_v5 }
 0x323   : > { %757 = vst [vmem:[%s280_s10 + $0x38] sm:$0xff] %v749_v3 }
 0x324   : > { %755 = vst [vmem:[%s280_s10 + $0x28] sm:$0xff] %v747_v2 }
 0x325 PF: > { %s17_s24 = sadd.s32 1, %s981_s24  }
 0x326   : > { %p14_p4 = scmp.ge.s32.totalorder %s17_s24, 4  }
 0x328   :  { %16 = sbr.rel (!%p14_p4) target bundleno = 1 (0x1), region = 78 }

</bundles_post_ra>
